<compile_context>
chip_gen: v7x
topology: tpu7x:2x2x1
jax: 0.10.0
libtpu: 0.0.40
codegen_flags: <defaults>
</compile_context>

<pallas_src>
import jax
import jax.numpy as jnp
from jax import lax
from jax.experimental import pallas as pl
from jax.experimental.pallas import tpu as pltpu

FEAT_DIM = 128
BATCH = 8            # must stay a multiple of 8 (f32 sublane) for this layout
DELTA = 0.3
LAMB = 0.0005


def hofel_loss_kernel(trip_ref, w_ref, out_ref, lhs_ref):
    # trip_ref: (3, B, F) stacked [skt, imgp, imgn];  w_ref: (F, F)
    skt = trip_ref[0].astype(jnp.float32)     # (B, F)
    imgp = trip_ref[1].astype(jnp.float32)    # (B, F)
    imgn = trip_ref[2].astype(jnp.float32)    # (B, F)
    w = w_ref[...].astype(jnp.float32)        # (F, F)

    batch = skt.shape[0]
    feat = skt.shape[1]

    # Stage [skt ; ones] into the (B+8, F) scratch; one MXU matmul yields both
    # skt@w (rows 0..B-1) and colsum(w) (row B) — the extra rows are free.
    lhs_ref[pl.ds(0, batch), :] = skt
    lhs_ref[pl.ds(batch, 8), :] = jnp.ones((8, feat), jnp.float32)
    prod = jnp.dot(lhs_ref[...], w, preferred_element_type=jnp.float32)  # (B+8, F)
    sw = prod[0:batch, :]                 # (B, F)  skt @ w
    colsum = prod[batch:batch + 1, :]     # (1, F)  sum_i w[i, j]

    # dp - dn with the skt^2·rowsum(w) term cancelled; single lane reduce.
    d = imgp - imgn                       # (B, F)
    s = imgp + imgn                       # (B, F)
    dp_minus_dn = jnp.sum(d * (s * colsum - 2.0 * sw),
                          axis=1, keepdims=True)               # (B, 1)

    hinge = jnp.maximum(DELTA + dp_minus_dn, 0.0)               # (B, 1)
    mean_hinge = jnp.sum(hinge) * (1.0 / batch)

    # Regularizer: L1 + Frobenius norm of (w - I); identity via iota compare.
    rows = lax.broadcasted_iota(jnp.int32, w.shape, 0)
    cols = lax.broadcasted_iota(jnp.int32, w.shape, 1)
    wd = w - (rows == cols).astype(jnp.float32)
    regu = jnp.sum(jnp.abs(wd)) + jnp.sqrt(jnp.sum(wd * wd))

    out_ref[0] = mean_hinge + LAMB * regu


def hofel_loss(triplet, w):
    """triplet: (3, B, F) stacked [skt, imgp, imgn] (stack at the producer)."""
    _, batch, feat = triplet.shape
    assert w.shape == (feat, feat)

    cost = pl.CostEstimate(
        flops=2 * (batch + 8) * feat * feat + 6 * feat * feat + 8 * batch * feat,
        transcendentals=1,  # the sqrt in the Frobenius norm
        bytes_accessed=(3 * batch * feat + feat * feat + 1) * 4,
    )

    out = pl.pallas_call(
        hofel_loss_kernel,
        out_shape=jax.ShapeDtypeStruct((1,), jnp.float32),
        in_specs=[
            pl.BlockSpec(memory_space=pltpu.MemorySpace.VMEM),  # stacked triplet
            pl.BlockSpec(memory_space=pltpu.MemorySpace.VMEM),  # w
        ],
        out_specs=pl.BlockSpec(memory_space=pltpu.MemorySpace.SMEM),
        scratch_shapes=[pltpu.VMEM((batch + 8, feat), jnp.float32)],
        cost_estimate=cost,
    )(triplet, w)
    return out[0]


def hofel_loss_ref(skt, imgp, imgn, w):
    # Pure-JAX reference mirroring the PyTorch module (explicit broadcast form).
    def dist(a, b):
        diff = a[:, :, None] - b[:, None, :]
        return (diff * diff * w[None, :, :]).sum(axis=(1, 2))

    dp = dist(skt, imgp)
    dn = dist(skt, imgn)
    hinge = jnp.maximum(DELTA + dp - dn, 0.0).mean()
    eye = jnp.eye(FEAT_DIM, dtype=jnp.float32)
    regu = jnp.abs(w - eye).sum() + jnp.sqrt(((w - eye) ** 2).sum())
    return hinge + LAMB * regu


if __name__ == "__main__":
    key = jax.random.PRNGKey(0)
    k1, k2, k3, k4 = jax.random.split(key, 4)

    skt = jax.random.normal(k1, (BATCH, FEAT_DIM), jnp.float32)
    imgp = jax.random.normal(k2, (BATCH, FEAT_DIM), jnp.float32)
    imgn = jax.random.normal(k3, (BATCH, FEAT_DIM), jnp.float32)

    # Stack the triplet where it is produced (single input buffer -> 2 DMAs).
    triplet = jnp.stack([skt, imgp, imgn], axis=0)   # (3, B, F)

    # Deterministic parameter init matching __init__: w = I + 0.05 * randn(F, F)
    w = (jnp.eye(FEAT_DIM, dtype=jnp.float32)
         + 0.05 * jax.random.normal(k4, (FEAT_DIM, FEAT_DIM), jnp.float32))

    loss = hofel_loss(triplet, w)
    loss = jax.block_until_ready(loss)

    expected = hofel_loss_ref(skt, imgp, imgn, w)
    # Algebraic rewrite changes summation order; allow a couple extra ULPs.
    assert jnp.allclose(loss, expected, rtol=2e-4, atol=1e-3), (loss, expected)

    print("KERNEL_OK")
</pallas_src>

<mosaic_0001>
module attributes {stable_mosaic.version = 11 : i64} {
  func.func @hofel_loss_kernel(%arg0: memref<3x8x128xf32, #tpu.memory_space<vmem>>, %arg1: memref<128x128xf32, #tpu.memory_space<vmem>>, %arg2: memref<1xf32, #tpu.memory_space<smem>>, %arg3: memref<16x128xf32, #tpu.memory_space<vmem>>) attributes {dimension_semantics = [], scalar_prefetch = 0 : i64, scratch_operands = 1 : i64, tpu.core_type = #tpu.core_type<tc>} {
    %c0 = arith.constant 0 : index
    %c0_0 = arith.constant 0 : index
    %c0_1 = arith.constant 0 : index
    %0 = vector.load %arg0[%c0, %c0_0, %c0_1] : memref<3x8x128xf32, #tpu.memory_space<vmem>>, vector<1x8x128xf32>
    %1 = vector.shape_cast %0 : vector<1x8x128xf32> to vector<8x128xf32>
    %c1 = arith.constant 1 : index
    %c0_2 = arith.constant 0 : index
    %c0_3 = arith.constant 0 : index
    %2 = vector.load %arg0[%c1, %c0_2, %c0_3] : memref<3x8x128xf32, #tpu.memory_space<vmem>>, vector<1x8x128xf32>
    %3 = vector.shape_cast %2 : vector<1x8x128xf32> to vector<8x128xf32>
    %c2 = arith.constant 2 : index
    %c0_4 = arith.constant 0 : index
    %c0_5 = arith.constant 0 : index
    %4 = vector.load %arg0[%c2, %c0_4, %c0_5] : memref<3x8x128xf32, #tpu.memory_space<vmem>>, vector<1x8x128xf32>
    %5 = vector.shape_cast %4 : vector<1x8x128xf32> to vector<8x128xf32>
    %c0_6 = arith.constant 0 : index
    %c0_7 = arith.constant 0 : index
    %6 = vector.load %arg1[%c0_6, %c0_7] : memref<128x128xf32, #tpu.memory_space<vmem>>, vector<128x128xf32>
    %c0_8 = arith.constant 0 : index
    %c0_9 = arith.constant 0 : index
    %7 = vector.load %arg3[%c0_8, %c0_9] : memref<16x128xf32, #tpu.memory_space<vmem>>, vector<8x128xf32>
    tpu.vector_store %arg3[%c0_8, %c0_9], %1 {strides = array<i32>} : memref<16x128xf32, #tpu.memory_space<vmem>>, vector<8x128xf32>,
    %cst = arith.constant 1.000000e+00 : f32
    %8 = vector.broadcast %cst : f32 to vector<8x128xf32>
    %c8 = arith.constant 8 : index
    %c0_10 = arith.constant 0 : index
    %9 = vector.load %arg3[%c8, %c0_10] : memref<16x128xf32, #tpu.memory_space<vmem>>, vector<8x128xf32>
    tpu.vector_store %arg3[%c8, %c0_10], %8 {strides = array<i32>} : memref<16x128xf32, #tpu.memory_space<vmem>>, vector<8x128xf32>,
    %c0_11 = arith.constant 0 : index
    %c0_12 = arith.constant 0 : index
    %10 = vector.load %arg3[%c0_11, %c0_12] : memref<16x128xf32, #tpu.memory_space<vmem>>, vector<16x128xf32>
    %cst_13 = arith.constant dense<0.000000e+00> : vector<16x128xf32>
    %11 = tpu.matmul %10, %6, %cst_13 {dimension_numbers = #tpu.dot_dimension_numbers<[1], [0], [0], [1], [0, 0, 1, 1], [], []>} : vector<16x128xf32>, vector<128x128xf32>, vector<16x128xf32> -> vector<16x128xf32>
    %12 = vector.extract_strided_slice %11 {offsets = [0, 0], sizes = [8, 128], strides = [1, 1]} : vector<16x128xf32> to vector<8x128xf32>
    %13 = vector.extract_strided_slice %11 {offsets = [8, 0], sizes = [1, 128], strides = [1, 1]} : vector<16x128xf32> to vector<1x128xf32>
    %14 = arith.subf %3, %5 : vector<8x128xf32>
    %15 = arith.addf %3, %5 : vector<8x128xf32>
    %16 = vector.broadcast %13 : vector<1x128xf32> to vector<8x128xf32>
    %17 = arith.mulf %15, %16 : vector<8x128xf32>
    %cst_14 = arith.constant 2.000000e+00 : f32
    %18 = vector.broadcast %cst_14 : f32 to vector<8x128xf32>
    %19 = arith.mulf %18, %12 : vector<8x128xf32>
    %20 = arith.subf %17, %19 : vector<8x128xf32>
    %21 = arith.mulf %14, %20 : vector<8x128xf32>
    %cst_15 = arith.constant dense<0.000000e+00> : vector<8xf32>
    %22 = vector.multi_reduction <add>, %21, %cst_15 [1] : vector<8x128xf32> to vector<8xf32>
    %23 = vector.shape_cast %22 : vector<8xf32> to vector<8x1xf32>
    %cst_16 = arith.constant 3.000000e-01 : f32
    %24 = vector.broadcast %cst_16 : f32 to vector<8x1xf32>
    %25 = arith.addf %24, %23 : vector<8x1xf32>
    %cst_17 = arith.constant 0.000000e+00 : f32
    %26 = vector.broadcast %cst_17 : f32 to vector<8x1xf32>
    %27 = arith.maximumf %25, %26 : vector<8x1xf32>
    %28 = vector.shape_cast %27 : vector<8x1xf32> to vector<1x8x1xf32>
    %cst_18 = arith.constant dense<0.000000e+00> : vector<1xf32>
    %29 = vector.multi_reduction <add>, %28, %cst_18 [1, 2] : vector<1x8x1xf32> to vector<1xf32>
    %30 = vector.shape_cast %29 : vector<1xf32> to vector<1x1x1xf32>
    %31 = vector.extract %30[0, 0, 0] : f32 from vector<1x1x1xf32>
    %cst_19 = arith.constant 1.250000e-01 : f32
    %32 = arith.mulf %31, %cst_19 : f32
    %33 = tpu.iota {dimensions = array<i32: 0>} : vector<128x128xi32>
    %34 = tpu.iota {dimensions = array<i32: 1>} : vector<128x128xi32>
    %35 = arith.cmpi eq, %33, %34 : vector<128x128xi32>
    %36 = arith.extui %35 : vector<128x128xi1> to vector<128x128xi32>
    %37 = arith.sitofp %36 : vector<128x128xi32> to vector<128x128xf32>
    %38 = arith.subf %6, %37 : vector<128x128xf32>
    %39 = math.absf %38 : vector<128x128xf32>
    %40 = vector.shape_cast %39 : vector<128x128xf32> to vector<1x128x128xf32>
    %cst_20 = arith.constant dense<0.000000e+00> : vector<1xf32>
    %41 = vector.multi_reduction <add>, %40, %cst_20 [1, 2] : vector<1x128x128xf32> to vector<1xf32>
    %42 = vector.shape_cast %41 : vector<1xf32> to vector<1x1x1xf32>
    %43 = vector.extract %42[0, 0, 0] : f32 from vector<1x1x1xf32>
    %44 = arith.mulf %38, %38 : vector<128x128xf32>
    %45 = vector.shape_cast %44 : vector<128x128xf32> to vector<1x128x128xf32>
    %cst_21 = arith.constant dense<0.000000e+00> : vector<1xf32>
    %46 = vector.multi_reduction <add>, %45, %cst_21 [1, 2] : vector<1x128x128xf32> to vector<1xf32>
    %47 = vector.shape_cast %46 : vector<1xf32> to vector<1x1x1xf32>
    %48 = vector.extract %47[0, 0, 0] : f32 from vector<1x1x1xf32>
    %49 = math.sqrt %48 : f32
    %50 = arith.addf %43, %49 : f32
    %cst_22 = arith.constant 5.000000e-04 : f32
    %51 = arith.mulf %cst_22, %50 : f32
    %52 = arith.addf %32, %51 : f32
    %c0_23 = arith.constant 0 : index
    %53 = memref.load %arg2[%c0_23] : memref<1xf32, #tpu.memory_space<smem>>
    memref.store %52, %arg2[%c0_23] : memref<1xf32, #tpu.memory_space<smem>>
    return
  }
}

</mosaic_0001>

<bundles_post_ra>
// kernel: tpu_custom_call.1
= control target key start
LH: loop header
LB: loop body
LE: loop exit
PB: predicated region body
PF: predicated region fallthrough
CT: control target
= control target key end

     0   :  { %7 = vsyncpa [#allocation4], 0  ;;  %s651_s0 = inlined_call_operand.hbm [shape: f32[3,8,128], index: 0, kind: input, shape index: {}]   ;;  %s652_s1 = inlined_call_operand.hbm [shape: f32[128,128], index: 1, kind: input, shape index: {}]   ;;  %s653_s2 = inlined_call_operand.hbm [shape: f32[1], index: 2, kind: output, shape index: {}]  }
   0x1   :  { %8 = vsyncpa [#allocation7], 0 }
   0x2   :  { %9 = vsyncpa [#allocation5], 0  ;;  %s536_s9 = smov [#allocation3]   ;;  %s476_s13 = scalar_lea.hbm %s651_s0, 384 }
   0x3   :  { %s15_s10 = sshll.u32 %s536_s9, 4  ;;  %p477_p0 = scmp.ne.s32.totalorder %s651_s0, %s476_s13  ;;  %s16_s10 = int_to_ptr.vmem [resolvable:$true] %s15_s10 }
   0x4   :  { %p480_p1 = scmp.lt.u32.totalorder %s476_s13, %s651_s0 }
   0x6   :  { %p482_p2 = pnand %p480_p1, %p477_p0 }
   0x8   :  { %485 = shalt.err (!%p482_p2)
}
   0x9   :  { %s486_s18 = scalar_lea.vmem %s16_s10, 384  ;;  %p491_p4 = scmp.lt.s32.totalorder %s16_s10, %s16_s10 }
   0xa   :  { %p487_p3 = scmp.ne.s32.totalorder %s16_s10, %s486_s18  ;;  %p492_p5 = scmp.lt.s32.totalorder %s486_s18, %s486_s18 }
   0xc   :  { %p493_p6 = por %p492_p5, %p491_p4 }
   0xe   :  { %p494_p7 = pnand %p493_p6, %p487_p3 }
  0x10   :  { %497 = shalt.err (!%p494_p7)
}
  0x11   :  { %s537_s19 = smov 128   ;;  %s538_s20 = smov 8  }
  0x12   :  { %21 = dma.hbm_to_vmem [thread:$0]  %s651_s0, 384, %s16_s10, [#allocation4], %s537_s19, %s537_s19, %s538_s20  }
  0x13   :  { %s539_s23 = smov [#allocation6]   ;;  %s498_s27 = scalar_lea.hbm %s652_s1, 2048 }
  0x14   :  { %s27_s24 = sshll.u32 %s539_s23, 4  ;;  %p499_p8 = scmp.ne.s32.totalorder %s652_s1, %s498_s27  ;;  %s28_s24 = int_to_ptr.vmem [resolvable:$true] %s27_s24 }
  0x15   :  { %p502_p9 = scmp.lt.u32.totalorder %s498_s27, %s652_s1 }
  0x17   :  { %p504_p10 = pnand %p502_p9, %p499_p8 }
  0x19   :  { %507 = shalt.err (!%p504_p10)
}
  0x1a   :  { %s508_s4 = scalar_lea.vmem %s28_s24, 2048  ;;  %p513_p12 = scmp.lt.s32.totalorder %s28_s24, %s28_s24 }
  0x1b   :  { %p509_p11 = scmp.ne.s32.totalorder %s28_s24, %s508_s4  ;;  %p514_p13 = scmp.lt.s32.totalorder %s508_s4, %s508_s4 }
  0x1d   :  { %p515_p0 = por %p514_p13, %p513_p12 }
  0x1f   :  { %p516_p1 = pnand %p515_p0, %p509_p11 }
  0x21   :  { %519 = shalt.err (!%p516_p1)
}
  0x22   :  { %33 = dma.hbm_to_vmem [thread:$0]  %s652_s1, 2048, %s28_s24, [#allocation7], %s537_s19, %s537_s19, %s538_s20  }
  0x23   :  { %530 = dma.done.wait [#allocation4], 384  }
  0x24   :  { %531 = vsyncadd [#allocation4], 4294966912 }
  0x25   :  { %532 = dma.done.wait [#allocation7], 2048  }
  0x26   :  { %533 = vsyncadd [#allocation7], 4294965248  ;;  %v142_v0 = vlaneseq  ;;  %v540_v6 = vmov 0.0   ;;  %v45_v12 = vld [vmem:[#allocation6] sm:$0xff]  ;;  %v46_v13 = vld [vmem:[#allocation6 + $0x8] sm:$0xff]  ;;  %s520_s15 = scalar_lea.hbm %s653_s2, 16 }
  0x27   :  { %v47_v15 = vld [vmem:[#allocation6 + $0x10] sm:$0xff]  ;;  %v427_v18 = vpack.c.bf16 %v46_v13, %v45_v12  ;;  %v48_v21 = vld [vmem:[#allocation6 + $0x18] sm:$0xff]  ;;  %v49_v23 = vld [vmem:[#allocation6 + $0x20] sm:$0xff]  ;;  %p521_p2 = scmp.ne.s32.totalorder %s653_s2, %s520_s15  ;;  %p524_p3 = scmp.lt.u32.totalorder %s520_s15, %s653_s2 }
  0x28   :  { %v582_v1 = vshrl.u32 %v142_v0, 7  ;;  %v584_v2 = vand.u32 127, %v142_v0  ;;  %v50_v24 = vld [vmem:[#allocation6 + $0x28] sm:$0xff]  ;;  %v431_v25 = vpack.c.bf16 %v48_v21, %v47_v15  ;;  %v51_v32 = vld [vmem:[#allocation6 + $0x30] sm:$0xff]  ;;  %v52_v33 = vld [vmem:[#allocation6 + $0x38] sm:$0xff] }
  0x29   :  { %v435_v27 = vpack.c.bf16 %v50_v24, %v49_v23  ;;  %428 = vmatprep.subr.bf16.mxu0 %v427_v18  ;;  %v439_v44 = vpack.c.bf16 %v52_v33, %v51_v32  ;;  %v40_v45 = vld [vmem:[#allocation3] sm:$0xff]  ;;  %v53_v49 = vld [vmem:[#allocation6 + $0x40] sm:$0xff]  ;;  %p526_p4 = pnand %p524_p3, %p521_p2 }
  0x2a   :  { %v168_v3 = vadd.s32 8, %v582_v1  ;;  %vm185_vm0 = vcmp.eq.s32.totalorder %v582_v1, %v584_v2  ;;  %v169_v4 = vadd.s32 16, %v582_v1  ;;  %v170_v5 = vadd.s32 24, %v582_v1  ;;  %430 = vmatpush3.bf16.msra.mxu0 %v427_v18  ;;  %v54_v50 = vld [vmem:[#allocation6 + $0x48] sm:$0xff]  ;;  %424 = vmatprep.mubr.f32.mxu0 %v40_v45 }
  0x2b   :  { %v358_v7 = vsel %vm185_vm0, 1.0, %v540_v6  ;;  %v171_v8 = vadd.s32 32, %v582_v1  ;;  %v172_v9 = vadd.s32 40, %v582_v1  ;;  %v173_v10 = vadd.s32 48, %v582_v1  ;;  %432 = vmatprep.subr.bf16.mxu0 %v431_v25 }
  0x2c   :  { %vm186_vm1 = vcmp.eq.s32.totalorder %v168_v3, %v584_v2  ;;  %vm187_vm2 = vcmp.eq.s32.totalorder %v169_v4, %v584_v2  ;;  %vm188_vm3 = vcmp.eq.s32.totalorder %v170_v5, %v584_v2  ;;  %v174_v11 = vadd.s32 56, %v582_v1 }
  0x2d   :  { %v359_v14 = vsel %vm186_vm1, 1.0, %v540_v6  ;;  %v360_v16 = vsel %vm187_vm2, 1.0, %v540_v6  ;;  %v361_v17 = vsel %vm188_vm3, 1.0, %v540_v6  ;;  %vm189_vm4 = vcmp.eq.s32.totalorder %v171_v8, %v584_v2 }
  0x2e   :  { %v233_v19 = vsub.f32 %v45_v12, %v358_v7  ;;  %v234_v20 = vsub.f32 %v46_v13, %v359_v14  ;;  %v235_v22 = vsub.f32 %v47_v15, %v360_v16  ;;  %v236_v26 = vsub.f32 %v48_v21, %v361_v17  ;;  %434 = vmatpush3.bf16.msra.mxu0 %v431_v25  ;;  %v55_v12 = vld [vmem:[#allocation6 + $0x50] sm:$0xff]  ;;  %v56_v13 = vld [vmem:[#allocation6 + $0x58] sm:$0xff] }
  0x2f   :  { %vm190_vm5 = vcmp.eq.s32.totalorder %v172_v9, %v584_v2  ;;  %v362_v40 = vsel %vm189_vm4, 1.0, %v540_v6  ;;  %vm191_vm6 = vcmp.eq.s32.totalorder %v173_v10, %v584_v2  ;;  %vm192_vm7 = vcmp.eq.s32.totalorder %v174_v11, %v584_v2  ;;  %436 = vmatprep.subr.bf16.mxu0 %v435_v27 }
  0x30   :  { %v249_v28 = vand.u32 2147483647, %v233_v19  ;;  %v250_v29 = vand.u32 2147483647, %v234_v20  ;;  %v289_v30 = vmul.f32 %v233_v19, %v233_v19  ;;  %v290_v31 = vmul.f32 %v234_v20, %v234_v20 }
  0x31   :  { %v251_v34 = vand.u32 2147483647, %v235_v22  ;;  %v252_v35 = vand.u32 2147483647, %v236_v26  ;;  %v291_v36 = vmul.f32 %v235_v22, %v235_v22  ;;  %v292_v37 = vmul.f32 %v236_v26, %v236_v26 }
  0x32   :  { %v265_v38 = vadd.f32 %v250_v29, %v249_v28  ;;  %v305_v39 = vadd.f32 %v290_v31, %v289_v30  ;;  %v363_v41 = vsel %vm190_vm5, 1.0, %v540_v6  ;;  %v237_v42 = vsub.f32 %v49_v23, %v362_v40  ;;  %438 = vmatpush3.bf16.msra.mxu0 %v435_v27  ;;  %v57_v27 = vld [vmem:[#allocation6 + $0x60] sm:$0xff]  ;;  %v58_v28 = vld [vmem:[#allocation6 + $0x68] sm:$0xff] }
  0x33   :  { %v238_v43 = vsub.f32 %v50_v24, %v363_v41  ;;  %v364_v48 = vsel %vm191_vm6, 1.0, %v540_v6  ;;  %v365_v57 = vsel %vm192_vm7, 1.0, %v540_v6  ;;  %v443_v60 = vpack.c.bf16 %v54_v50, %v53_v49  ;;  %440 = vmatprep.subr.bf16.mxu0 %v439_v44 }
  0x34   :  { %v266_v46 = vadd.f32 %v265_v38, %v251_v34  ;;  %v306_v47 = vadd.f32 %v305_v39, %v291_v36  ;;  %v253_v51 = vand.u32 2147483647, %v237_v42  ;;  %v293_v53 = vmul.f32 %v237_v42, %v237_v42  ;;  %v59_v36 = vld [vmem:[#allocation6 + $0x70] sm:$0xff] }
  0x35   :  { %v254_v52 = vand.u32 2147483647, %v238_v43  ;;  %v294_v54 = vmul.f32 %v238_v43, %v238_v43  ;;  %v239_v58 = vsub.f32 %v51_v32, %v364_v48  ;;  %v240_v59 = vsub.f32 %v52_v33, %v365_v57 }
  0x36   :  { %v267_v55 = vadd.f32 %v266_v46, %v252_v35  ;;  %v307_v56 = vadd.f32 %v306_v47, %v292_v37  ;;  %v175_v61 = vadd.s32 64, %v582_v1  ;;  %v176_v62 = vadd.s32 72, %v582_v1  ;;  %442 = vmatpush3.bf16.msra.mxu0 %v439_v44  ;;  %v60_v37 = vld [vmem:[#allocation6 + $0x78] sm:$0xff] }
  0x37   :  { %v255_v3 = vand.u32 2147483647, %v239_v58  ;;  %v295_v4 = vmul.f32 %v239_v58, %v239_v58  ;;  %v256_v5 = vand.u32 2147483647, %v240_v59  ;;  %v296_v7 = vmul.f32 %v240_v59, %v240_v59  ;;  %444 = vmatprep.subr.bf16.mxu0 %v443_v60 }
  0x38   :  { %v268_v63 = vadd.f32 %v267_v55, %v253_v51  ;;  %v308_v0 = vadd.f32 %v307_v56, %v293_v53  ;;  %vm193_vm8 = vcmp.eq.s32.totalorder %v175_v61, %v584_v2  ;;  %vm194_vm9 = vcmp.eq.s32.totalorder %v176_v62, %v584_v2 }
  0x39   :  { %v366_v10 = vsel %vm193_vm8, 1.0, %v540_v6  ;;  %v367_v11 = vsel %vm194_vm9, 1.0, %v540_v6  ;;  %v177_v16 = vadd.s32 80, %v582_v1  ;;  %v447_v22 = vpack.c.bf16 %v56_v13, %v55_v12 }
  0x3a   :  { %v269_v8 = vadd.f32 %v268_v63, %v254_v52  ;;  %v309_v9 = vadd.f32 %v308_v0, %v294_v54  ;;  %v241_v14 = vsub.f32 %v53_v49, %v366_v10  ;;  %v242_v15 = vsub.f32 %v54_v50, %v367_v11  ;;  %446 = vmatpush3.bf16.msra.mxu0 %v443_v60 }
  0x3b   :  { %vm195_vm10 = vcmp.eq.s32.totalorder %v177_v16, %v584_v2  ;;  %448 = vmatprep.subr.bf16.mxu0 %v447_v22  ;;  %v451_v34 = vpack.c.bf16 %v58_v28, %v57_v27  ;;  %v455_v39 = vpack.c.bf16 %v60_v37, %v59_v36  ;;  %v541_v40 = vmov 1.0   ;;  %v42_v16 = vld [vmem:[#allocation3 + $0x8] sm:$0xff] }
  0x3c   :  { %v270_v17 = vadd.f32 %v269_v8, %v255_v3  ;;  %v310_v18 = vadd.f32 %v309_v9, %v295_v4  ;;  %v257_v19 = vand.u32 2147483647, %v241_v14  ;;  %v258_v20 = vand.u32 2147483647, %v242_v15 }
  0x3d   :  { %v297_v21 = vmul.f32 %v241_v14, %v241_v14  ;;  %v298_v25 = vmul.f32 %v242_v15, %v242_v15  ;;  %v368_v26 = vsel %vm195_vm10, 1.0, %v540_v6  ;;  %v178_v41 = vadd.s32 88, %v582_v1 }
  0x3e   :  { %v271_v23 = vadd.f32 %v270_v17, %v256_v5  ;;  %v311_v24 = vadd.f32 %v310_v18, %v296_v7  ;;  %v243_v31 = vsub.f32 %v55_v12, %v368_v26  ;;  %450 = vmatpush3.bf16.msra.mxu0 %v447_v22  ;;  %v179_v42 = vadd.s32 96, %v582_v1  ;;  %v44_v17 = vld [vmem:[#allocation3 + $0x10] sm:$0xff] }
  0x3f   :  { %452 = vmatprep.subr.bf16.mxu0 %v451_v34  ;;  %v180_v43 = vadd.s32 104, %v582_v1  ;;  %vm196_vm11 = vcmp.eq.s32.totalorder %v178_v41, %v584_v2  ;;  %v181_v54 = vadd.s32 112, %v582_v1  ;;  %v182_v55 = vadd.s32 120, %v582_v1 }
  0x40   :  { %v272_v29 = vadd.f32 %v271_v23, %v257_v19  ;;  %v312_v30 = vadd.f32 %v311_v24, %v297_v21  ;;  %v299_v35 = vmul.f32 %v243_v31, %v243_v31  ;;  %vm197_vm12 = vcmp.eq.s32.totalorder %v179_v42, %v584_v2 }
  0x41   :  { %v369_v44 = vsel %vm196_vm11, 1.0, %v540_v6  ;;  %vm198_vm13 = vcmp.eq.s32.totalorder %v180_v43, %v584_v2  ;;  %v370_v45 = vsel %vm197_vm12, 1.0, %v540_v6  ;;  %v259_v48 = vand.u32 2147483647, %v243_v31 }
  0x42   :  { %v273_v32 = vadd.f32 %v272_v29, %v258_v20  ;;  %v313_v33 = vadd.f32 %v312_v30, %v298_v25  ;;  %454 = vmatpush3.bf16.msra.mxu0 %v451_v34  ;;  %v244_v46 = vsub.f32 %v56_v13, %v369_v44  ;;  %v371_v47 = vsel %vm198_vm13, 1.0, %v540_v6 }
  0x43   :  { %456 = vmatprep.subr.bf16.mxu0 %v455_v39  ;;  %v245_v50 = vsub.f32 %v57_v27, %v370_v45  ;;  %v246_v51 = vsub.f32 %v58_v28, %v371_v47  ;;  %vm199_vm14 = vcmp.eq.s32.totalorder %v181_v54, %v584_v2  ;;  %vm200_vm15 = vcmp.eq.s32.totalorder %v182_v55, %v584_v2 }
  0x44   :  { %v314_v38 = vadd.f32 %v313_v33, %v299_v35  ;;  %v300_v49 = vmul.f32 %v244_v46, %v244_v46  ;;  %v260_v52 = vand.u32 2147483647, %v244_v46  ;;  %v274_v57 = vadd.f32 %v273_v32, %v259_v48 }
  0x45   :  { %v301_v53 = vmul.f32 %v245_v50, %v245_v50  ;;  %v261_v56 = vand.u32 2147483647, %v245_v50  ;;  %v302_v58 = vmul.f32 %v246_v51, %v246_v51  ;;  %v262_v60 = vand.u32 2147483647, %v246_v51 }
  0x46   :  { %458 = vmatpush3.bf16.msra.mxu0 %v455_v39  ;;  %v315_v59 = vadd.f32 %v314_v38, %v300_v49  ;;  %v372_v61 = vsel %vm199_vm14, 1.0, %v540_v6  ;;  %v373_v62 = vsel %vm200_vm15, 1.0, %v540_v6  ;;  %v275_v63 = vadd.f32 %v274_v57, %v260_v52 }
  0x47   :  { %v247_v3 = vsub.f32 %v59_v36, %v372_v61  ;;  %v248_v4 = vsub.f32 %v60_v37, %v373_v62  ;;  %v144_v6 = vsub.s32 0, %v582_v1  ;;  %v141_v18 = vadd.f32 %v44_v17, %v42_v16 }
  0x48   :  { %v316_v0 = vadd.f32 %v315_v59, %v301_v53  ;;  %v276_v5 = vadd.f32 %v275_v63, %v261_v56  ;;  %v140_v24 = vsub.f32 %v42_v16, %v44_v17  ;;  %vm154_vm0 = vcmask 7168  }
  0x49   :  { %425 = vmatmul.mubr.f32.vlgmr.msra.gmra.mrb[0].mxu0 %v541_v40  ;;  %v263_v8 = vand.u32 2147483647, %v247_v3  ;;  %v303_v9 = vmul.f32 %v247_v3, %v247_v3  ;;  %v264_v10 = vand.u32 2147483647, %v248_v4  ;;  %v304_v13 = vmul.f32 %v248_v4, %v248_v4 }
  0x4a   :  { %v317_v7 = vadd.f32 %v316_v0, %v302_v58  ;;  %v277_v11 = vadd.f32 %v276_v5, %v262_v60 }
  0x4c   :  { %v278_v12 = vadd.f32 %v277_v11, %v263_v8  ;;  %v318_v14 = vadd.f32 %v317_v7, %v303_v9 }
  0x4e   :  { %v279_v15 = vadd.f32 %v278_v12, %v264_v10  ;;  %v319_v2 = vadd.f32 %v318_v14, %v304_v13 }
  0x50   :  { %280 = vadd.xlane.f32.xlu1 %v279_v15 }
  0x54   :  { %320 = vadd.xlane.f32.xlu1 %v319_v2 }
  0xdd   :  { %v281_v31 = vpop.xlane.xlu1 %280 }
  0xde   :  { %v282_v33 = vrot.slane %v281_v31, 4 }
  0xe0   :  { %v283_v34 = vadd.f32 %v282_v33, %v281_v31 }
  0xe1   :  { %v321_v32 = vpop.xlane.xlu1 %320 }
  0xe2   :  { %v322_v1 = vrot.slane %v321_v32, 4  ;;  %v284_v36 = vrot.slane %v283_v34, 2 }
  0xe4   :  { %v323_v35 = vadd.f32 %v322_v1, %v321_v32  ;;  %v285_v41 = vadd.f32 %v284_v36, %v283_v34 }
  0xe6   :  { %v324_v38 = vrot.slane %v323_v35, 2  ;;  %v286_v45 = vrot.slane %v285_v41, 1 }
  0xe8   :  { %v325_v42 = vadd.f32 %v324_v38, %v323_v35  ;;  %v287_v49 = vadd.f32 %v286_v45, %v285_v41 }
  0xea   :  { %v326_v47 = vrot.slane %v325_v42, 1 }
  0xec   :  { %v327_v50 = vadd.f32 %v326_v47, %v325_v42 }
 0x11c   :  { %v426_v19 = vpop.f32.mrb[0].mxu0 }
 0x11d   :  { %v145_v20 = vrot.slane %v426_v19, %v144_v6  ;;  %v131_v21 = vpop.f32.mrb[1].mxu0 }
 0x11e   :  { %v147_v22 = vmul.f32 2.0, %v131_v21 }
 0x11f   :  { %v146_v23 = vmul.f32 %v145_v20, %v141_v18 }
 0x121   :  { %v148_v25 = vsub.f32 %v146_v23, %v147_v22 }
 0x123   :  { %v149_v26 = vmul.f32 %v148_v25, %v140_v24 }
 0x125   :  { %150 = vadd.xlane.f32.xlu0 %v149_v26 }
 0x1b2   :  { %v151_v27 = vpop.xlane.xlu0 %150 }
 0x1b3   :  { %v152_v28 = vadd.f32 0.3, %v151_v27 }
 0x1b5   :  { %v153_v29 = vmax.f32 %v152_v28, 0.0 }
 0x1b7   :  { %v155_v30 = vsel %vm154_vm0, %v153_v29, 0.0 }
 0x1b8   :  { %156 = vadd.xlane.f32.xlu0 %v155_v30 }
 0x245   :  { %v157_v37 = vpop.xlane.xlu0 %156 }
 0x246   :  { %v158_v39 = vrot.slane %v157_v37, 4 }
 0x248   :  { %v159_v40 = vadd.f32 %v158_v39, %v157_v37 }
 0x24a   :  { %v160_v43 = vrot.slane %v159_v40, 2 }
 0x24c   :  { %v161_v44 = vadd.f32 %v160_v43, %v159_v40 }
 0x24e   :  { %v162_v46 = vrot.slane %v161_v44, 1 }
 0x250   :  { %v163_v48 = vadd.f32 %v162_v46, %v161_v44 }
 0x252   :  { %459 = vpush %v163_v48 }
 0x253   :  { %461 = vpush %v287_v49 }
 0x254   :  { %463 = vpush %v327_v50 }
 0x283   :  { %s460_s1 = spop %459 }
 0x284   :  { %s462_s6 = spop %461  ;;  %s165_s10 = smul.f32 0.125, %s460_s1 }
 0x285   :  { %s464_s7 = spop %463 }
 0x286   :  { %v329_v51 = vstv %s464_s7 }
 0x287   :  { %474 = vrsqrt.f32 %v329_v51  ;;  %vm332_vm1 = vcmp.eq.f32.partialorder %v329_v51, inf  ;;  %v335_v54 = vand.u32 2147483648, %v329_v51  ;;  %vm334_vm2 = vcmp.eq.f32.partialorder %v329_v51, 0.0 }
 0x291   :  { %v475_v52 = vpop.eup %474 }
 0x292   :  { %v331_v53 = vmul.f32 %v475_v52, %v329_v51 }
 0x294   :  { %v333_v55 = vsel %vm332_vm1, %v329_v51, %v331_v53 }
 0x295   :  { %v336_v56 = vsel %vm334_vm2, %v335_v54, %v333_v55 }
 0x296   :  { %465 = vpush %v336_v56 }
 0x2c7   :  { %s466_s8 = spop %465 }
 0x2c8   :  { %s338_s9 = sadd.f32 %s466_s8, %s462_s6 }
 0x2ca   :  { %s339_s11 = smul.f32 0.0005, %s338_s9 }
 0x2cc   :  { %s340_s12 = sadd.f32 %s339_s11, %s165_s10 }
 0x2ce   :  { %342 = sst [smem:[#allocation8]] %s340_s12 }
 0x2cf   :  { %529 = shalt.err (!%p526_p4)
}
 0x2d0   :  { %s542_s20 = smov [#allocation8]  }
 0x2d1   :  { %350 = dma.smem_to_hbm %s542_s20, 16, %s653_s2, [#allocation5]  }
 0x2d2   :  { %534 = dma.done.wait [#allocation5], 16  }
 0x2d3   :  { %535 = vsyncadd [#allocation5], 4294967280 }
 0x2d4   :  { %354 = sfence }
 0x2d5   :  { %355 = vsyncpa [#allocation4], 1 }
 0x2d6   :  { %356 = vsyncpa [#allocation7], 1 }
 0x2d7   :  { %357 = vsyncpa [#allocation5], 1 }

</bundles_post_ra>
